<compile_context>
chip_gen: v7x
topology: tpu7x:2x2x1
jax: 0.10.0
libtpu: 0.0.40
codegen_flags: <defaults>
</compile_context>

<pallas_src>
import functools

import jax
import jax.numpy as jnp
from jax.experimental import pallas as pl
from jax.experimental.pallas import tpu as pltpu

BN_EPS = 1e-5
LANE = 128
NPASS = 4  # 3 BN-moment passes + 1 emit pass in the tiled schedule


def _round_up(n, m):
    return ((n + m - 1) // m) * m


def _nbytes(a):
    return int(a.size) * jnp.dtype(a.dtype).itemsize


# --------------------------------------------------------------------------
# Shared in-kernel math
# --------------------------------------------------------------------------
def _linear(a_f32, w_ref, b_ref):
    """a @ W + b with MXU accumulation in f32.

    Activations are cast to the stored weight dtype (f32 or bf16) so the same
    kernel serves both precisions; bias add stays f32 on the VPU.
    """
    y = jnp.dot(a_f32.astype(w_ref.dtype), w_ref[...],
                preferred_element_type=jnp.float32)
    return y + b_ref[...].astype(jnp.float32)


def _bn_from_moments(h, s, q, gamma, beta, inv_b):
    """BatchNorm1d (train mode) from accumulated sum / sum-of-squares (f32)."""
    mean = s * inv_b
    var = jnp.maximum(q * inv_b - mean * mean, 0.0)   # clamp tiny negatives
    scale = jax.lax.rsqrt(var + BN_EPS) * gamma       # rsqrt -> EUP
    return (h - mean) * scale + beta


# --------------------------------------------------------------------------
# Kernel 1: gridless (whole batch resident) — small-B / latency regime
# --------------------------------------------------------------------------
def mlp_decoder_kernel(x_ref,
                       w1, b1, g1, be1,
                       w2, b2, g2, be2,
                       w3, b3, g3, be3,
                       w4, b4,
                       out_ref):
    inv_b = 1.0 / x_ref.shape[0]   # static batch size

    def stage(h, g_ref, be_ref):
        s = jnp.sum(h, axis=0, keepdims=True)
        q = jnp.sum(h * h, axis=0, keepdims=True)
        return _bn_from_moments(h, s, q, g_ref[...], be_ref[...], inv_b)

    x = x_ref[...].astype(jnp.float32)
    h = stage(jnp.maximum(_linear(x, w1, b1), 0.0), g1, be1)
    h = stage(jnp.maximum(_linear(h, w2, b2), 0.0), g2, be2)
    h = stage(jnp.maximum(_linear(h, w3, b3), 0.0), g3, be3)
    out_ref[...] = _linear(h, w4, b4).astype(out_ref.dtype)


# --------------------------------------------------------------------------
# Kernel 2: batch-tiled, 4-pass recompute schedule.
#   grid = (pass, batch_tile); pass axis OUTER (BN couples the whole batch):
#     pass 0: stage1 per tile, accumulate sum/sumsq of h1     -> s1,q1
#     pass 1: stages 1-2, accumulate moments of h2            -> s2,q2
#     pass 2: stages 1-3, accumulate moments of h3            -> s3,q3
#     pass 3: stages 1-4 fully normalized, write output tile
#   Weights / biases / BN params stay VMEM-resident (constant index_map).
# --------------------------------------------------------------------------
def mlp_decoder_tiled_kernel(x_ref,
                             w1, b1, g1, be1,
                             w2, b2, g2, be2,
                             w3, b3, g3, be3,
                             w4, b4,
                             out_ref,
                             s1, q1, s2, q2, s3, q3,
                             *, inv_b):
    p = pl.program_id(0)
    t = pl.program_id(1)

    @pl.when(jnp.logical_and(p == 0, t == 0))
    def _init():
        s1[...] = jnp.zeros_like(s1)
        q1[...] = jnp.zeros_like(q1)
        s2[...] = jnp.zeros_like(s2)
        q2[...] = jnp.zeros_like(q2)
        s3[...] = jnp.zeros_like(s3)
        q3[...] = jnp.zeros_like(q3)

    x = x_ref[...].astype(jnp.float32)
    h1 = jnp.maximum(_linear(x, w1, b1), 0.0)

    @pl.when(p == 0)
    def _acc1():
        s1[...] += jnp.sum(h1, axis=0, keepdims=True)
        q1[...] += jnp.sum(h1 * h1, axis=0, keepdims=True)

    @pl.when(p >= 1)
    def _from_stage2():
        h1n = _bn_from_moments(h1, s1[...], q1[...], g1[...], be1[...], inv_b)
        h2 = jnp.maximum(_linear(h1n, w2, b2), 0.0)

        @pl.when(p == 1)
        def _acc2():
            s2[...] += jnp.sum(h2, axis=0, keepdims=True)
            q2[...] += jnp.sum(h2 * h2, axis=0, keepdims=True)

        @pl.when(p >= 2)
        def _from_stage3():
            h2n = _bn_from_moments(h2, s2[...], q2[...], g2[...], be2[...], inv_b)
            h3 = jnp.maximum(_linear(h2n, w3, b3), 0.0)

            @pl.when(p == 2)
            def _acc3():
                s3[...] += jnp.sum(h3, axis=0, keepdims=True)
                q3[...] += jnp.sum(h3 * h3, axis=0, keepdims=True)

            @pl.when(p == NPASS - 1)
            def _emit():
                h3n = _bn_from_moments(h3, s3[...], q3[...], g3[...], be3[...],
                                       inv_b)
                out_ref[...] = _linear(h3n, w4, b4).astype(out_ref.dtype)

    @pl.when(p != NPASS - 1)
    def _placeholder():
        # Keep every writeback of this revisited output block well-defined;
        # the final pass overwrites it with the real values.
        out_ref[...] = jnp.zeros_like(out_ref)


# --------------------------------------------------------------------------
# Parameters
# --------------------------------------------------------------------------
def init_params(key, in_dim, in_dim2, hidden_dim, out_dim, binary=1):
    """Synthetic parameters with the module's logical shapes.

    Linear weights stored as (in_features, out_features) so y = x @ W + b
    (PyTorch W_pt = W.T); biases / BN params stored as (1, features).
    """
    dims = [
        ("1", in_dim + in_dim2, hidden_dim),
        ("2", hidden_dim, hidden_dim),
        ("3", hidden_dim, out_dim),
        ("4", out_dim, binary),
    ]
    params = {}
    for name, din, dout in dims:
        key, kw, kb = jax.random.split(key, 3)
        bound = 1.0 / (din ** 0.5)
        params[f"w{name}"] = jax.random.uniform(
            kw, (din, dout), jnp.float32, -bound, bound)
        params[f"b{name}"] = jax.random.uniform(
            kb, (1, dout), jnp.float32, -bound, bound)
        if name != "4":  # BN after fc1/fc2/fc3 only
            params[f"g{name}"] = jnp.ones((1, dout), jnp.float32)
            params[f"be{name}"] = jnp.zeros((1, dout), jnp.float32)
    return params


def pad_params(params, weight_dtype=jnp.float32):
    """Zero-pad feature dims to 128-lane multiples (once, off the hot path).

    Zero-padded columns stay exactly zero through fc+ReLU+BN (mean=0, var=0,
    beta=0), so the first `binary` output columns match the unpadded model.
    Weight matrices are optionally stored in bf16 (MXU operands); biases and
    BN parameters stay f32.
    """
    def pad2(a, rows, cols, dtype=jnp.float32):
        a = jnp.pad(a, ((0, rows - a.shape[0]), (0, cols - a.shape[1])))
        return a.astype(dtype)

    in_total = params["w1"].shape[0]
    hidden = params["w1"].shape[1]
    out_dim = params["w3"].shape[1]
    binary = params["w4"].shape[1]

    h_p = _round_up(hidden, LANE)
    o_p = _round_up(out_dim, LANE)
    b_p = _round_up(binary, LANE)

    p = {
        "w1": pad2(params["w1"], in_total, h_p, weight_dtype),
        "b1": pad2(params["b1"], 1, h_p),
        "g1": pad2(params["g1"], 1, h_p),
        "be1": pad2(params["be1"], 1, h_p),
        "w2": pad2(params["w2"], h_p, h_p, weight_dtype),
        "b2": pad2(params["b2"], 1, h_p),
        "g2": pad2(params["g2"], 1, h_p),
        "be2": pad2(params["be2"], 1, h_p),
        "w3": pad2(params["w3"], h_p, o_p, weight_dtype),
        "b3": pad2(params["b3"], 1, o_p),
        "g3": pad2(params["g3"], 1, o_p),
        "be3": pad2(params["be3"], 1, o_p),
        "w4": pad2(params["w4"], o_p, b_p, weight_dtype),
        "b4": pad2(params["b4"], 1, b_p),
    }
    return p, binary


# --------------------------------------------------------------------------
# Wrapper
# --------------------------------------------------------------------------
def _pick_batch_tile(B):
    for tb in (1024, 512, 256, 128, 64, 32, 16, 8):
        if B % tb == 0:
            return tb
    return None


def _vmem_limit(need_bytes):
    # Explicit scoped-VMEM request: headroom above the estimate, floored at
    # 16 MiB, capped at v7x's 64 MiB physical VMEM.
    return int(min(max(need_bytes + (4 << 20), 16 << 20), 64 << 20))


def _cost_estimate(B, k1, h, o, n, w_bytes, tiled):
    mults = (4, 3, 2, 1) if tiled else (1, 1, 1, 1)  # recompute factor / stage
    flops = 2 * B * (mults[0] * k1 * h + mults[1] * h * h
                     + mults[2] * h * o + mults[3] * o * n)
    flops += 3 * 7 * B * h                           # rough BN / ReLU VPU work
    transcendentals = 2 * h + o                      # one rsqrt per BN feature
    n_pass = NPASS if tiled else 1
    bytes_accessed = (
        n_pass * B * k1 * 4 + n_pass * B * n * 4          # x reads, out writes
        + (k1 * h + h * h + h * o + o * n) * w_bytes      # weights (resident)
        + (3 * h + 3 * o + n + 2 * (2 * h + o)) * 4)      # biases + BN params
    return pl.CostEstimate(flops=int(flops),
                           transcendentals=int(transcendentals),
                           bytes_accessed=int(bytes_accessed))


@functools.partial(jax.jit, static_argnames=("binary", "force_mode"))
def mlp_decoder(x, padded_params, binary, force_mode=None):
    """x: (B, in_dim + in_dim2) float32.  padded_params: from pad_params()."""
    p = padded_params
    B, k1 = x.shape
    h_p = p["w1"].shape[1]
    o_p = p["w3"].shape[1]
    b_p = p["w4"].shape[1]
    w_bytes = jnp.dtype(p["w1"].dtype).itemsize
    param_bytes = sum(_nbytes(a) for a in p.values())

    tb = _pick_batch_tile(B)
    # Whole batch resident: params + x + out + ~6 live (B, width) f32 buffers.
    gridless_need = (param_bytes + _nbytes(x) + B * b_p * 4
                     + 6 * B * max(h_p, o_p) * 4)

    mode = force_mode
    if mode is None:
        mode = "gridless" if gridless_need <= (40 << 20) else "tiled"
    if mode == "tiled" and tb is None:
        mode = "gridless"   # batch not 8-divisible; see TODO(synk) above.

    args = (x,
            p["w1"], p["b1"], p["g1"], p["be1"],
            p["w2"], p["b2"], p["g2"], p["be2"],
            p["w3"], p["b3"], p["g3"], p["be3"],
            p["w4"], p["b4"])

    if mode == "gridless":
        vspec = pl.BlockSpec(memory_space=pltpu.MemorySpace.VMEM)
        out_padded = pl.pallas_call(
            mlp_decoder_kernel,
            out_shape=jax.ShapeDtypeStruct((B, b_p), jnp.float32),
            in_specs=[vspec] * len(args),
            out_specs=vspec,
            compiler_params=pltpu.CompilerParams(
                vmem_limit_bytes=_vmem_limit(gridless_need)),
            cost_estimate=_cost_estimate(B, k1, h_p, o_p, b_p, w_bytes, False),
        )(*args)
    else:
        nb = B // tb
        tiled_need = (param_bytes
                      + 2 * (tb * k1 * 4 + tb * b_p * 4)   # double-buffered io
                      + 6 * tb * max(h_p, o_p) * 4         # live intermediates
                      + 6 * max(h_p, o_p) * 4)             # moment scratch

        def const_spec(arr):
            return pl.BlockSpec(arr.shape, lambda pp, tt: (0, 0))

        in_specs = [pl.BlockSpec((tb, k1), lambda pp, tt: (tt, 0))]
        in_specs += [const_spec(a) for a in args[1:]]
        out_spec = pl.BlockSpec((tb, b_p), lambda pp, tt: (tt, 0))
        scratch = ([pltpu.VMEM((1, h_p), jnp.float32)] * 4
                   + [pltpu.VMEM((1, o_p), jnp.float32)] * 2)

        kernel = functools.partial(mlp_decoder_tiled_kernel, inv_b=1.0 / B)
        out_padded = pl.pallas_call(
            kernel,
            out_shape=jax.ShapeDtypeStruct((B, b_p), jnp.float32),
            grid_spec=pltpu.PrefetchScalarGridSpec(
                num_scalar_prefetch=0,
                grid=(NPASS, nb),
                in_specs=in_specs,
                out_specs=out_spec,
                scratch_shapes=scratch),
            compiler_params=pltpu.CompilerParams(
                dimension_semantics=("arbitrary", "arbitrary"),
                vmem_limit_bytes=_vmem_limit(tiled_need)),
            cost_estimate=_cost_estimate(B, k1, h_p, o_p, b_p, w_bytes, True),
        )(*args)

    # TODO(synk): at tiny B this slice is one extra XLA copy op; drop it if
    # the caller can consume the lane-padded slab directly.
    return out_padded[:, :binary]


# --------------------------------------------------------------------------
# Pure-JAX reference (unpadded params, two-pass BN, train mode)
# --------------------------------------------------------------------------
def _bn_ref(h, gamma, beta):
    mean = jnp.mean(h, axis=0, keepdims=True)
    var = jnp.mean((h - mean) ** 2, axis=0, keepdims=True)
    return (h - mean) * jax.lax.rsqrt(var + BN_EPS) * gamma + beta


def mlp_decoder_ref(x, p):
    hi = jax.lax.Precision.HIGHEST
    h = _bn_ref(jnp.maximum(jnp.dot(x, p["w1"], precision=hi) + p["b1"], 0.0),
                p["g1"], p["be1"])
    h = _bn_ref(jnp.maximum(jnp.dot(h, p["w2"], precision=hi) + p["b2"], 0.0),
                p["g2"], p["be2"])
    h = _bn_ref(jnp.maximum(jnp.dot(h, p["w3"], precision=hi) + p["b3"], 0.0),
                p["g3"], p["be3"])
    return jnp.dot(h, p["w4"], precision=hi) + p["b4"]


if __name__ == "__main__":
    in_dim, in_dim2, hidden_dim, out_dim, binary = 16, 16, 32, 16, 1

    key = jax.random.PRNGKey(0)
    key, kx1, kx2 = jax.random.split(key, 3)
    params = init_params(key, in_dim, in_dim2, hidden_dim, out_dim, binary)

    # One-time, off the hot path: pad feature dims to 128-lane multiples.
    pp_f32, bw = pad_params(params, weight_dtype=jnp.float32)
    pp_bf16, _ = pad_params(params, weight_dtype=jnp.bfloat16)

    # --- small batch: gridless, latency-optimized path --------------------
    B_small = 8
    x_small = jax.random.normal(kx1, (B_small, in_dim + in_dim2), jnp.float32)
    out_small = jax.block_until_ready(
        mlp_decoder(x_small, pp_f32, bw, force_mode="gridless"))
    ref_small = mlp_decoder_ref(x_small, params)
    assert out_small.shape == (B_small, binary)
    assert jnp.allclose(out_small, ref_small, atol=1e-3, rtol=1e-3), \
        "gridless f32 path mismatch vs reference"

    # --- larger batch: batch-tiled two-pass-BN pipelined path --------------
    B_big = 32   # tile = 8 rows -> grid (4 passes, 4 batch tiles)
    x_big = jax.random.normal(kx2, (B_big, in_dim + in_dim2), jnp.float32)
    out_big = jax.block_until_ready(
        mlp_decoder(x_big, pp_f32, bw, force_mode="tiled"))
    ref_big = mlp_decoder_ref(x_big, params)
    assert out_big.shape == (B_big, binary)
    assert jnp.allclose(out_big, ref_big, atol=1e-3, rtol=1e-3), \
        "batch-tiled f32 path mismatch vs reference"

    # --- bf16 MXU operands (weights bf16, f32 accumulate, f32 BN) ----------
    out_bf16 = jax.block_until_ready(
        mlp_decoder(x_big, pp_bf16, bw, force_mode="tiled"))
    assert jnp.allclose(out_bf16, ref_big, atol=1.5e-1, rtol=1.5e-1), \
        "batch-tiled bf16 path mismatch vs reference"

    print("KERNEL_OK")
</pallas_src>

<mosaic_0001>
module attributes {stable_mosaic.version = 11 : i64} {
  func.func @mlp_decoder_kernel(%arg0: memref<8x32xf32, #tpu.memory_space<vmem>>, %arg1: memref<32x128xf32, #tpu.memory_space<vmem>>, %arg2: memref<1x128xf32, #tpu.memory_space<vmem>>, %arg3: memref<1x128xf32, #tpu.memory_space<vmem>>, %arg4: memref<1x128xf32, #tpu.memory_space<vmem>>, %arg5: memref<128x128xf32, #tpu.memory_space<vmem>>, %arg6: memref<1x128xf32, #tpu.memory_space<vmem>>, %arg7: memref<1x128xf32, #tpu.memory_space<vmem>>, %arg8: memref<1x128xf32, #tpu.memory_space<vmem>>, %arg9: memref<128x128xf32, #tpu.memory_space<vmem>>, %arg10: memref<1x128xf32, #tpu.memory_space<vmem>>, %arg11: memref<1x128xf32, #tpu.memory_space<vmem>>, %arg12: memref<1x128xf32, #tpu.memory_space<vmem>>, %arg13: memref<128x128xf32, #tpu.memory_space<vmem>>, %arg14: memref<1x128xf32, #tpu.memory_space<vmem>>, %arg15: memref<8x128xf32, #tpu.memory_space<vmem>>) attributes {dimension_semantics = [], scalar_prefetch = 0 : i64, scratch_operands = 0 : i64, tpu.core_type = #tpu.core_type<tc>} {
    %c0 = arith.constant 0 : index
    %c0_0 = arith.constant 0 : index
    %0 = vector.load %arg0[%c0, %c0_0] : memref<8x32xf32, #tpu.memory_space<vmem>>, vector<8x32xf32>
    %c0_1 = arith.constant 0 : index
    %c0_2 = arith.constant 0 : index
    %1 = vector.load %arg1[%c0_1, %c0_2] : memref<32x128xf32, #tpu.memory_space<vmem>>, vector<32x128xf32>
    %cst = arith.constant dense<0.000000e+00> : vector<8x128xf32>
    %2 = tpu.matmul %0, %1, %cst {dimension_numbers = #tpu.dot_dimension_numbers<[1], [0], [0], [1], [0, 0, 1, 1], [], []>} : vector<8x32xf32>, vector<32x128xf32>, vector<8x128xf32> -> vector<8x128xf32>
    %c0_3 = arith.constant 0 : index
    %c0_4 = arith.constant 0 : index
    %3 = vector.load %arg2[%c0_3, %c0_4] : memref<1x128xf32, #tpu.memory_space<vmem>>, vector<1x128xf32>
    %4 = vector.broadcast %3 : vector<1x128xf32> to vector<8x128xf32>
    %5 = arith.addf %2, %4 : vector<8x128xf32>
    %cst_5 = arith.constant 0.000000e+00 : f32
    %6 = vector.broadcast %cst_5 : f32 to vector<8x128xf32>
    %7 = arith.maximumf %5, %6 : vector<8x128xf32>
    %cst_6 = arith.constant dense<0.000000e+00> : vector<128xf32>
    %8 = vector.multi_reduction <add>, %7, %cst_6 [0] : vector<8x128xf32> to vector<128xf32>
    %9 = vector.shape_cast %8 : vector<128xf32> to vector<1x128xf32>
    %10 = arith.mulf %7, %7 : vector<8x128xf32>
    %cst_7 = arith.constant dense<0.000000e+00> : vector<128xf32>
    %11 = vector.multi_reduction <add>, %10, %cst_7 [0] : vector<8x128xf32> to vector<128xf32>
    %12 = vector.shape_cast %11 : vector<128xf32> to vector<1x128xf32>
    %c0_8 = arith.constant 0 : index
    %c0_9 = arith.constant 0 : index
    %13 = vector.load %arg3[%c0_8, %c0_9] : memref<1x128xf32, #tpu.memory_space<vmem>>, vector<1x128xf32>
    %c0_10 = arith.constant 0 : index
    %c0_11 = arith.constant 0 : index
    %14 = vector.load %arg4[%c0_10, %c0_11] : memref<1x128xf32, #tpu.memory_space<vmem>>, vector<1x128xf32>
    %cst_12 = arith.constant 1.250000e-01 : f32
    %15 = vector.broadcast %cst_12 : f32 to vector<1x128xf32>
    %16 = arith.mulf %9, %15 : vector<1x128xf32>
    %cst_13 = arith.constant 1.250000e-01 : f32
    %17 = vector.broadcast %cst_13 : f32 to vector<1x128xf32>
    %18 = arith.mulf %12, %17 : vector<1x128xf32>
    %19 = arith.mulf %16, %16 : vector<1x128xf32>
    %20 = arith.subf %18, %19 : vector<1x128xf32>
    %cst_14 = arith.constant 0.000000e+00 : f32
    %21 = vector.broadcast %cst_14 : f32 to vector<1x128xf32>
    %22 = arith.maximumf %20, %21 : vector<1x128xf32>
    %cst_15 = arith.constant 9.99999974E-6 : f32
    %23 = vector.broadcast %cst_15 : f32 to vector<1x128xf32>
    %24 = arith.addf %22, %23 : vector<1x128xf32>
    %25 = math.rsqrt %24 : vector<1x128xf32>
    %26 = arith.mulf %25, %13 : vector<1x128xf32>
    %27 = vector.broadcast %16 : vector<1x128xf32> to vector<8x128xf32>
    %28 = arith.subf %7, %27 : vector<8x128xf32>
    %29 = vector.broadcast %26 : vector<1x128xf32> to vector<8x128xf32>
    %30 = arith.mulf %28, %29 : vector<8x128xf32>
    %31 = vector.broadcast %14 : vector<1x128xf32> to vector<8x128xf32>
    %32 = arith.addf %30, %31 : vector<8x128xf32>
    %c0_16 = arith.constant 0 : index
    %c0_17 = arith.constant 0 : index
    %33 = vector.load %arg5[%c0_16, %c0_17] : memref<128x128xf32, #tpu.memory_space<vmem>>, vector<128x128xf32>
    %cst_18 = arith.constant dense<0.000000e+00> : vector<8x128xf32>
    %34 = tpu.matmul %32, %33, %cst_18 {dimension_numbers = #tpu.dot_dimension_numbers<[1], [0], [0], [1], [0, 0, 1, 1], [], []>} : vector<8x128xf32>, vector<128x128xf32>, vector<8x128xf32> -> vector<8x128xf32>
    %c0_19 = arith.constant 0 : index
    %c0_20 = arith.constant 0 : index
    %35 = vector.load %arg6[%c0_19, %c0_20] : memref<1x128xf32, #tpu.memory_space<vmem>>, vector<1x128xf32>
    %36 = vector.broadcast %35 : vector<1x128xf32> to vector<8x128xf32>
    %37 = arith.addf %34, %36 : vector<8x128xf32>
    %cst_21 = arith.constant 0.000000e+00 : f32
    %38 = vector.broadcast %cst_21 : f32 to vector<8x128xf32>
    %39 = arith.maximumf %37, %38 : vector<8x128xf32>
    %cst_22 = arith.constant dense<0.000000e+00> : vector<128xf32>
    %40 = vector.multi_reduction <add>, %39, %cst_22 [0] : vector<8x128xf32> to vector<128xf32>
    %41 = vector.shape_cast %40 : vector<128xf32> to vector<1x128xf32>
    %42 = arith.mulf %39, %39 : vector<8x128xf32>
    %cst_23 = arith.constant dense<0.000000e+00> : vector<128xf32>
    %43 = vector.multi_reduction <add>, %42, %cst_23 [0] : vector<8x128xf32> to vector<128xf32>
    %44 = vector.shape_cast %43 : vector<128xf32> to vector<1x128xf32>
    %c0_24 = arith.constant 0 : index
    %c0_25 = arith.constant 0 : index
    %45 = vector.load %arg7[%c0_24, %c0_25] : memref<1x128xf32, #tpu.memory_space<vmem>>, vector<1x128xf32>
    %c0_26 = arith.constant 0 : index
    %c0_27 = arith.constant 0 : index
    %46 = vector.load %arg8[%c0_26, %c0_27] : memref<1x128xf32, #tpu.memory_space<vmem>>, vector<1x128xf32>
    %cst_28 = arith.constant 1.250000e-01 : f32
    %47 = vector.broadcast %cst_28 : f32 to vector<1x128xf32>
    %48 = arith.mulf %41, %47 : vector<1x128xf32>
    %cst_29 = arith.constant 1.250000e-01 : f32
    %49 = vector.broadcast %cst_29 : f32 to vector<1x128xf32>
    %50 = arith.mulf %44, %49 : vector<1x128xf32>
    %51 = arith.mulf %48, %48 : vector<1x128xf32>
    %52 = arith.subf %50, %51 : vector<1x128xf32>
    %cst_30 = arith.constant 0.000000e+00 : f32
    %53 = vector.broadcast %cst_30 : f32 to vector<1x128xf32>
    %54 = arith.maximumf %52, %53 : vector<1x128xf32>
    %cst_31 = arith.constant 9.99999974E-6 : f32
    %55 = vector.broadcast %cst_31 : f32 to vector<1x128xf32>
    %56 = arith.addf %54, %55 : vector<1x128xf32>
    %57 = math.rsqrt %56 : vector<1x128xf32>
    %58 = arith.mulf %57, %45 : vector<1x128xf32>
    %59 = vector.broadcast %48 : vector<1x128xf32> to vector<8x128xf32>
    %60 = arith.subf %39, %59 : vector<8x128xf32>
    %61 = vector.broadcast %58 : vector<1x128xf32> to vector<8x128xf32>
    %62 = arith.mulf %60, %61 : vector<8x128xf32>
    %63 = vector.broadcast %46 : vector<1x128xf32> to vector<8x128xf32>
    %64 = arith.addf %62, %63 : vector<8x128xf32>
    %c0_32 = arith.constant 0 : index
    %c0_33 = arith.constant 0 : index
    %65 = vector.load %arg9[%c0_32, %c0_33] : memref<128x128xf32, #tpu.memory_space<vmem>>, vector<128x128xf32>
    %cst_34 = arith.constant dense<0.000000e+00> : vector<8x128xf32>
    %66 = tpu.matmul %64, %65, %cst_34 {dimension_numbers = #tpu.dot_dimension_numbers<[1], [0], [0], [1], [0, 0, 1, 1], [], []>} : vector<8x128xf32>, vector<128x128xf32>, vector<8x128xf32> -> vector<8x128xf32>
    %c0_35 = arith.constant 0 : index
    %c0_36 = arith.constant 0 : index
    %67 = vector.load %arg10[%c0_35, %c0_36] : memref<1x128xf32, #tpu.memory_space<vmem>>, vector<1x128xf32>
    %68 = vector.broadcast %67 : vector<1x128xf32> to vector<8x128xf32>
    %69 = arith.addf %66, %68 : vector<8x128xf32>
    %cst_37 = arith.constant 0.000000e+00 : f32
    %70 = vector.broadcast %cst_37 : f32 to vector<8x128xf32>
    %71 = arith.maximumf %69, %70 : vector<8x128xf32>
    %cst_38 = arith.constant dense<0.000000e+00> : vector<128xf32>
    %72 = vector.multi_reduction <add>, %71, %cst_38 [0] : vector<8x128xf32> to vector<128xf32>
    %73 = vector.shape_cast %72 : vector<128xf32> to vector<1x128xf32>
    %74 = arith.mulf %71, %71 : vector<8x128xf32>
    %cst_39 = arith.constant dense<0.000000e+00> : vector<128xf32>
    %75 = vector.multi_reduction <add>, %74, %cst_39 [0] : vector<8x128xf32> to vector<128xf32>
    %76 = vector.shape_cast %75 : vector<128xf32> to vector<1x128xf32>
    %c0_40 = arith.constant 0 : index
    %c0_41 = arith.constant 0 : index
    %77 = vector.load %arg11[%c0_40, %c0_41] : memref<1x128xf32, #tpu.memory_space<vmem>>, vector<1x128xf32>
    %c0_42 = arith.constant 0 : index
    %c0_43 = arith.constant 0 : index
    %78 = vector.load %arg12[%c0_42, %c0_43] : memref<1x128xf32, #tpu.memory_space<vmem>>, vector<1x128xf32>
    %cst_44 = arith.constant 1.250000e-01 : f32
    %79 = vector.broadcast %cst_44 : f32 to vector<1x128xf32>
    %80 = arith.mulf %73, %79 : vector<1x128xf32>
    %cst_45 = arith.constant 1.250000e-01 : f32
    %81 = vector.broadcast %cst_45 : f32 to vector<1x128xf32>
    %82 = arith.mulf %76, %81 : vector<1x128xf32>
    %83 = arith.mulf %80, %80 : vector<1x128xf32>
    %84 = arith.subf %82, %83 : vector<1x128xf32>
    %cst_46 = arith.constant 0.000000e+00 : f32
    %85 = vector.broadcast %cst_46 : f32 to vector<1x128xf32>
    %86 = arith.maximumf %84, %85 : vector<1x128xf32>
    %cst_47 = arith.constant 9.99999974E-6 : f32
    %87 = vector.broadcast %cst_47 : f32 to vector<1x128xf32>
    %88 = arith.addf %86, %87 : vector<1x128xf32>
    %89 = math.rsqrt %88 : vector<1x128xf32>
    %90 = arith.mulf %89, %77 : vector<1x128xf32>
    %91 = vector.broadcast %80 : vector<1x128xf32> to vector<8x128xf32>
    %92 = arith.subf %71, %91 : vector<8x128xf32>
    %93 = vector.broadcast %90 : vector<1x128xf32> to vector<8x128xf32>
    %94 = arith.mulf %92, %93 : vector<8x128xf32>
    %95 = vector.broadcast %78 : vector<1x128xf32> to vector<8x128xf32>
    %96 = arith.addf %94, %95 : vector<8x128xf32>
    %c0_48 = arith.constant 0 : index
    %c0_49 = arith.constant 0 : index
    %97 = vector.load %arg13[%c0_48, %c0_49] : memref<128x128xf32, #tpu.memory_space<vmem>>, vector<128x128xf32>
    %cst_50 = arith.constant dense<0.000000e+00> : vector<8x128xf32>
    %98 = tpu.matmul %96, %97, %cst_50 {dimension_numbers = #tpu.dot_dimension_numbers<[1], [0], [0], [1], [0, 0, 1, 1], [], []>} : vector<8x128xf32>, vector<128x128xf32>, vector<8x128xf32> -> vector<8x128xf32>
    %c0_51 = arith.constant 0 : index
    %c0_52 = arith.constant 0 : index
    %99 = vector.load %arg14[%c0_51, %c0_52] : memref<1x128xf32, #tpu.memory_space<vmem>>, vector<1x128xf32>
    %100 = vector.broadcast %99 : vector<1x128xf32> to vector<8x128xf32>
    %101 = arith.addf %98, %100 : vector<8x128xf32>
    %c0_53 = arith.constant 0 : index
    %c0_54 = arith.constant 0 : index
    %102 = vector.load %arg15[%c0_53, %c0_54] : memref<8x128xf32, #tpu.memory_space<vmem>>, vector<8x128xf32>
    tpu.vector_store %arg15[%c0_53, %c0_54], %101 {strides = array<i32>} : memref<8x128xf32, #tpu.memory_space<vmem>>, vector<8x128xf32>,
    return
  }
}

</mosaic_0001>

<bundles_post_ra>
// kernel: mlp_decoder.1
= control target key start
LH: loop header
LB: loop body
LE: loop exit
PB: predicated region body
PF: predicated region fallthrough
CT: control target
= control target key end

     0   :  { %s1228_s0 = inlined_call_operand.hbm [shape: f32[8,32], index: 0, kind: input, shape index: {}]   ;;  %s1229_s1 = inlined_call_operand.vmem [shape: f32[32,128], index: 1, kind: input, shape index: {}]   ;;  %s1230_s2 = inlined_call_operand.vmem [shape: f32[1,128], index: 2, kind: input, shape index: {}]   ;;  %s1231_s3 = inlined_call_operand.vmem [shape: f32[1,128], index: 3, kind: input, shape index: {}]   ;;  %s1232_s4 = inlined_call_operand.vmem [shape: f32[1,128], index: 4, kind: input, shape index: {}]   ;;  %s1233_s5 = inlined_call_operand.hbm [shape: f32[128,128], index: 5, kind: input, shape index: {}]   ;;  %s1234_s6 = inlined_call_operand.vmem [shape: f32[1,128], index: 6, kind: input, shape index: {}]   ;;  %s1235_s7 = inlined_call_operand.vmem [shape: f32[1,128], index: 7, kind: input, shape index: {}]   ;;  %s1236_s8 = inlined_call_operand.vmem [shape: f32[1,128], index: 8, kind: input, shape index: {}]   ;;  %s1237_s9 = inlined_call_operand.hbm [shape: f32[128,128], index: 9, kind: input, shape index: {}]   ;;  %s1238_s10 = inlined_call_operand.vmem [shape: f32[1,128], index: 10, kind: input, shape index: {}]   ;;  %s1239_s11 = inlined_call_operand.vmem [shape: f32[1,128], index: 11, kind: input, shape index: {}]   ;;  %s1240_s12 = inlined_call_operand.vmem [shape: f32[1,128], index: 12, kind: input, shape index: {}]   ;;  %s1241_s13 = inlined_call_operand.hbm [shape: f32[128,128], index: 13, kind: input, shape index: {}]   ;;  %s1242_s14 = inlined_call_operand.hbm [shape: f32[1,128], index: 14, kind: input, shape index: {}]   ;;  %s1243_s15 = inlined_call_operand.vmem [shape: f32[8,128], index: 15, kind: output, shape index: {}]  }
   0x1   :  { %1244 = sst [smem:[#allocation13_spill]] %s1243_s15 }
   0x2   :  { %20 = vsyncpa [#allocation3], 0 }
   0x3   :  { %21 = vsyncpa [#allocation5], 0 }
   0x4   :  { %22 = vsyncpa [#allocation8], 0  ;;  %s988_s18 = smov [#allocation4]   ;;  %s872_s22 = scalar_lea.hbm %s1233_s5, 2048 }
   0x5   :  { %s46_s19 = sshll.u32 %s988_s18, 4  ;;  %p873_p0 = scmp.ne.s32.totalorder %s1233_s5, %s872_s22  ;;  %s47_s19 = int_to_ptr.vmem [resolvable:$true] %s46_s19 }
   0x6   :  { %p876_p1 = scmp.lt.u32.totalorder %s872_s22, %s1233_s5 }
   0x8   :  { %p878_p2 = pnand %p876_p1, %p873_p0 }
   0xa   :  { %881 = shalt.err (!%p878_p2)
}
   0xb   :  { %s882_s27 = scalar_lea.vmem %s47_s19, 2048  ;;  %p887_p4 = scmp.lt.s32.totalorder %s47_s19, %s47_s19 }
   0xc   :  { %p883_p3 = scmp.ne.s32.totalorder %s47_s19, %s882_s27  ;;  %p888_p5 = scmp.lt.s32.totalorder %s882_s27, %s882_s27 }
   0xe   :  { %p889_p6 = por %p888_p5, %p887_p4 }
  0x10   :  { %p890_p7 = pnand %p889_p6, %p883_p3 }
  0x12   :  { %893 = shalt.err (!%p890_p7)
}
  0x13   :  { %s989_s28 = smov 128   ;;  %s990_s29 = smov 8  }
  0x14   :  { %52 = dma.hbm_to_vmem [thread:$0]  %s1233_s5, 2048, %s47_s19, [#allocation5], %s989_s28, %s989_s28, %s990_s29  }
  0x15   :  { %s991_s17 = smov [#allocation7]   ;;  %s992_s20 = smov [#allocation2]  }
  0x16   :  { %s82_s18 = sshll.u32 %s991_s17, 4  ;;  %s29_s21 = sshll.u32 %s992_s20, 4  ;;  %s83_s18 = int_to_ptr.vmem [resolvable:$true] %s82_s18  ;;  %s30_s21 = int_to_ptr.vmem [resolvable:$true] %s29_s21 }
  0x17   :  { %s894_s24 = scalar_lea.hbm %s1241_s13, 2048 }
  0x18   :  { %p895_p8 = scmp.ne.s32.totalorder %s1241_s13, %s894_s24  ;;  %p898_p9 = scmp.lt.u32.totalorder %s894_s24, %s1241_s13 }
  0x1a   :  { %p900_p10 = pnand %p898_p9, %p895_p8 }
  0x1c   :  { %903 = shalt.err (!%p900_p10)
}
  0x1d   :  { %s904_s5 = scalar_lea.vmem %s83_s18, 2048  ;;  %p909_p12 = scmp.lt.s32.totalorder %s83_s18, %s83_s18 }
  0x1e   :  { %p905_p11 = scmp.ne.s32.totalorder %s83_s18, %s904_s5  ;;  %p910_p13 = scmp.lt.s32.totalorder %s904_s5, %s904_s5 }
  0x20   :  { %p911_p0 = por %p910_p13, %p909_p12 }
  0x22   :  { %p912_p1 = pnand %p911_p0, %p905_p11 }
  0x24   :  { %915 = shalt.err (!%p912_p1)
}
  0x25   :  { %88 = dma.hbm_to_vmem [thread:$0]  %s1241_s13, 2048, %s83_s18, [#allocation8], %s989_s28, %s989_s28, %s990_s29  }
  0x26   :  { %s916_s17 = scalar_lea.hbm %s1228_s0, 128 }
  0x27   :  { %p917_p2 = scmp.ne.s32.totalorder %s1228_s0, %s916_s17  ;;  %p920_p3 = scmp.lt.u32.totalorder %s916_s17, %s1228_s0 }
  0x29   :  { %p922_p4 = pnand %p920_p3, %p917_p2 }
  0x2b   :  { %925 = shalt.err (!%p922_p4)
}
  0x2c   :  { %s926_s25 = scalar_lea.vmem %s30_s21, 128  ;;  %p931_p6 = scmp.lt.s32.totalorder %s30_s21, %s30_s21 }
  0x2d   :  { %p927_p5 = scmp.ne.s32.totalorder %s30_s21, %s926_s25  ;;  %p932_p7 = scmp.lt.s32.totalorder %s926_s25, %s926_s25 }
  0x2f   :  { %p933_p8 = por %p932_p7, %p931_p6 }
  0x31   :  { %p934_p9 = pnand %p933_p8, %p927_p5 }
  0x33   :  { %937 = shalt.err (!%p934_p9)
}
  0x34   :  { %32 = dma.hbm_to_vmem [thread:$0]  %s1228_s0, 128, %s30_s21, [#allocation3]  }
  0x35   :  { %s993_s26 = smov [#allocation6]   ;;  %s994_s5 = smov [#allocation9]  }
  0x36   :  { %s64_s27 = sshll.u32 %s993_s26, 4  ;;  %s95_s19 = sshll.u32 %s994_s5, 4  ;;  %s65_s27 = int_to_ptr.vmem [resolvable:$true] %s64_s27  ;;  %s96_s19 = int_to_ptr.vmem [resolvable:$true] %s95_s19 }
  0x37   :  { %s938_s15 = scalar_lea.hbm %s1237_s9, 2048 }
  0x38   :  { %p939_p10 = scmp.ne.s32.totalorder %s1237_s9, %s938_s15  ;;  %p942_p11 = scmp.lt.u32.totalorder %s938_s15, %s1237_s9 }
  0x3a   :  { %p944_p12 = pnand %p942_p11, %p939_p10 }
  0x3c   :  { %947 = shalt.err (!%p944_p12)
}
  0x3d   :  { %s948_s0 = scalar_lea.vmem %s65_s27, 2048  ;;  %p953_p0 = scmp.lt.s32.totalorder %s65_s27, %s65_s27 }
  0x3e   :  { %p949_p13 = scmp.ne.s32.totalorder %s65_s27, %s948_s0  ;;  %p954_p1 = scmp.lt.s32.totalorder %s948_s0, %s948_s0 }
  0x40   :  { %p955_p2 = por %p954_p1, %p953_p0 }
  0x42   :  { %p956_p3 = pnand %p955_p2, %p949_p13 }
  0x44   :  { %959 = shalt.err (!%p956_p3)
}
  0x45   :  { %70 = dma.hbm_to_vmem [thread:$0]  %s1237_s9, 2048, %s65_s27, [#allocation5], %s989_s28, %s989_s28, %s990_s29  }
  0x46   :  { %s960_s18 = scalar_lea.hbm %s1242_s14, 16 }
  0x47   :  { %p961_p4 = scmp.ne.s32.totalorder %s1242_s14, %s960_s18  ;;  %p964_p5 = scmp.lt.u32.totalorder %s960_s18, %s1242_s14 }
  0x49   :  { %p966_p6 = pnand %p964_p5, %p961_p4 }
  0x4b   :  { %969 = shalt.err (!%p966_p6)
}
  0x4c   :  { %s970_s15 = scalar_lea.vmem %s96_s19, 16  ;;  %s974_s17 = scalar_lea.vmem %s96_s19, 32 }
  0x4d   :  { %p971_p7 = scmp.ne.s32.totalorder %s96_s19, %s970_s15  ;;  %p975_p8 = scmp.lt.s32.totalorder %s96_s19, %s96_s19 }
  0x4e   :  { %p976_p9 = scmp.lt.s32.totalorder %s974_s17, %s970_s15 }
  0x50   :  { %p977_p10 = por %p976_p9, %p975_p8 }
  0x52   :  { %p978_p11 = pnand %p977_p10, %p971_p7 }
  0x54   :  { %981 = shalt.err (!%p978_p11)
}
  0x55   :  { %98 = dma.hbm_to_vmem [thread:$0]  %s1242_s14, 16, %s96_s19, [#allocation8]  }
  0x56   :  { %982 = dma.done.wait [#allocation3], 128  }
  0x57   :  { %983 = vsyncadd [#allocation3], 4294967168 }
  0x58   :  { %984 = dma.done.wait [#allocation5], 4096  }
  0x59   :  { %985 = vsyncadd [#allocation5], 4294963200 }
  0x5a   :  { %986 = dma.done.wait [#allocation8], 2064  }
  0x5b   :  { %987 = vsyncadd [#allocation8], 4294965232  ;;  %v995_v0 = vmov 0.0|0.0   ;;  %vm996_vm0 = vmmov 0   ;;  %v997_v1 = vmov 0.0   ;;  %v115_v2 = vld [vmem:[%s1229_s1] sm:$0xff]  ;;  %v225_v57 = vlaneseq }
  0x5c   :  { %778 = vmatprep.subr.bf16.mxu0 %v995_v0  ;;  %670 = vmatprep.mubr.msk.f32.mxu0 %vm996_vm0, %v997_v1  ;;  %v116_v3 = vld [vmem:[%s1229_s1 + $0x8] sm:$0xff]  ;;  %v117_v4 = vld [vmem:[%s1229_s1 + $0x10] sm:$0xff]  ;;  %v118_v6 = vld [vmem:[%s1229_s1 + $0x18] sm:$0xff]  ;;  %vm126_vm1 = vcmask 261120   ;;  %s1245_s28 = sld [smem:[#allocation13_spill]] }
  0x5d   :  { %784 = vmatprep.subr.bf16.mxu1 %v995_v0  ;;  %705 = vmatprep.mubr.msk.f32.mxu1 %vm996_vm0, %v997_v1  ;;  %v779_v5 = vpack.c.bf16 %v116_v3, %v115_v2  ;;  %v782_v7 = vpack.c.bf16 %v118_v6, %v117_v4  ;;  %v114_v8 = vld [vmem:[#allocation2] sm:$0xff]  ;;  %v237_v9 = vld [vmem:[#allocation4] sm:$0xff]  ;;  %v238_v10 = vld [vmem:[#allocation4 + $0x8] sm:$0xff]  ;;  %v226_v58 = vshrl.u32 %v225_v57, 7 }
  0x5e   :  { %v785_v11 = vpack.c.bf16 %v238_v10, %v237_v9  ;;  %v239_v12 = vld [vmem:[#allocation4 + $0x10] sm:$0xff]  ;;  %v240_v13 = vld [vmem:[#allocation4 + $0x18] sm:$0xff]  ;;  %v241_v15 = vld [vmem:[#allocation4 + $0x20] sm:$0xff] }
  0x5f   :  { %780 = vmatpush3.bf16.msra.mxu0 %v779_v5  ;;  %v788_v14 = vpack.c.bf16 %v240_v13, %v239_v12  ;;  %v242_v16 = vld [vmem:[#allocation4 + $0x28] sm:$0xff]  ;;  %v243_v18 = vld [vmem:[#allocation4 + $0x30] sm:$0xff]  ;;  %v244_v19 = vld [vmem:[#allocation4 + $0x38] sm:$0xff]  ;;  %v1183_v60 = vsub.s32 0, %v226_v58 }
  0x60   :  { %781 = vmatprep.subr.bf16.mxu0 %v995_v0  ;;  %786 = vmatpush3.bf16.msra.mxu1 %v785_v11  ;;  %v791_v17 = vpack.c.bf16 %v242_v16, %v241_v15  ;;  %v794_v20 = vpack.c.bf16 %v244_v19, %v243_v18  ;;  %v245_v21 = vld [vmem:[#allocation4 + $0x40] sm:$0xff]  ;;  %v246_v22 = vld [vmem:[#allocation4 + $0x48] sm:$0xff]  ;;  %v247_v24 = vld [vmem:[#allocation4 + $0x50] sm:$0xff] }
  0x61   :  { %787 = vmatprep.subr.bf16.mxu1 %v995_v0  ;;  %v797_v23 = vpack.c.bf16 %v246_v22, %v245_v21  ;;  %v248_v25 = vld [vmem:[#allocation4 + $0x58] sm:$0xff]  ;;  %v249_v27 = vld [vmem:[#allocation4 + $0x60] sm:$0xff]  ;;  %v250_v28 = vld [vmem:[#allocation4 + $0x68] sm:$0xff] }
  0x62   :  { %v800_v26 = vpack.c.bf16 %v248_v25, %v247_v24  ;;  %v803_v29 = vpack.c.bf16 %v250_v28, %v249_v27  ;;  %v251_v30 = vld [vmem:[#allocation4 + $0x70] sm:$0xff]  ;;  %v252_v31 = vld [vmem:[#allocation4 + $0x78] sm:$0xff]  ;;  %v367_v6 = vld [vmem:[#allocation6] sm:$0xff] }
  0x63   :  { %783 = vmatpush3.bf16.msra.mxu0 %v782_v7  ;;  %v806_v32 = vpack.c.bf16 %v252_v31, %v251_v30  ;;  %v598_v33 = vld [vmem:[%s1230_s2] ss:$0 sm:$0xff]  ;;  %v368_v7 = vld [vmem:[#allocation6 + $0x8] sm:$0xff]  ;;  %v369_v9 = vld [vmem:[#allocation6 + $0x10] sm:$0xff] }
  0x64   :  { %808 = vmatprep.subr.bf16.mxu0 %v995_v0  ;;  %789 = vmatpush3.bf16.msra.mxu1 %v788_v14  ;;  %v214_v59 = vld [vmem:[%s1231_s3] sm:$0x1]  ;;  %v371_v12 = vld [vmem:[#allocation6 + $0x20] sm:$0xff]  ;;  %v372_v13 = vld [vmem:[#allocation6 + $0x28] sm:$0xff] }
  0x65   :  { %790 = vmatprep.subr.bf16.mxu1 %v995_v0  ;;  %v600_v3 = vld [vmem:[%s1232_s4] ss:$0 sm:$0xff]  ;;  %v815_v14 = vpack.c.bf16 %v372_v13, %v371_v12  ;;  %v373_v15 = vld [vmem:[#allocation6 + $0x30] sm:$0xff]  ;;  %v376_v18 = vld [vmem:[#allocation6 + $0x48] sm:$0xff] }
  0x66   :  { %671 = vmatmul.mubr.msk.f32.vlgmr.msra.gmra.mrb[0].mxu0 %vm126_vm1, %v114_v8  ;;  %v809_v8 = vpack.c.bf16 %v368_v7, %v367_v6  ;;  %v370_v10 = vld [vmem:[#allocation6 + $0x18] sm:$0xff]  ;;  %v380_v24 = vld [vmem:[#allocation6 + $0x68] sm:$0xff]  ;;  %v501_v6 = vld [vmem:[#allocation7 + $0x20] sm:$0xff] }
  0x67   :  { %740 = vmatprep.mubr.msk.f32.mxu0 %vm996_vm0, %v997_v1  ;;  %v812_v11 = vpack.c.bf16 %v370_v10, %v369_v9  ;;  %v378_v21 = vld [vmem:[#allocation6 + $0x58] sm:$0xff]  ;;  %v502_v7 = vld [vmem:[#allocation7 + $0x28] sm:$0xff]  ;;  %v503_v9 = vld [vmem:[#allocation7 + $0x30] sm:$0xff] }
  0x68   :  { %792 = vmatpush3.bf16.msra.mxu1 %v791_v17  ;;  %810 = vmatpush3.bf16.msra.mxu0 %v809_v8  ;;  %v375_v17 = vld [vmem:[#allocation6 + $0x40] sm:$0xff]  ;;  %v382_v27 = vld [vmem:[#allocation6 + $0x78] sm:$0xff]  ;;  %v839_v8 = vpack.c.bf16 %v502_v7, %v501_v6  ;;  %v506_v13 = vld [vmem:[#allocation7 + $0x48] sm:$0xff] }
  0x69   :  { %793 = vmatprep.subr.bf16.mxu1 %v995_v0  ;;  %811 = vmatprep.subr.bf16.mxu0 %v995_v0  ;;  %v821_v19 = vpack.c.bf16 %v376_v18, %v375_v17  ;;  %v602_v58 = vld [vmem:[%s1236_s8] ss:$0 sm:$0xff]  ;;  %v505_v12 = vld [vmem:[#allocation7 + $0x40] sm:$0xff]  ;;  %v510_v18 = vld [vmem:[#allocation7 + $0x68] sm:$0xff] }
  0x6a   :  { %v504_v10 = vld [vmem:[#allocation7 + $0x38] sm:$0xff]  ;;  %v509_v17 = vld [vmem:[#allocation7 + $0x60] sm:$0xff] }
  0x6c   :  { %795 = vmatpush3.bf16.msra.mxu1 %v794_v20  ;;  %813 = vmatpush3.bf16.msra.mxu0 %v812_v11  ;;  %v377_v20 = vld [vmem:[#allocation6 + $0x50] sm:$0xff]  ;;  %v842_v11 = vpack.c.bf16 %v504_v10, %v503_v9 }
  0x6d   :  { %796 = vmatprep.subr.bf16.mxu1 %v995_v0  ;;  %814 = vmatprep.subr.bf16.mxu0 %v995_v0  ;;  %v824_v22 = vpack.c.bf16 %v378_v21, %v377_v20  ;;  %v511_v20 = vld [vmem:[#allocation7 + $0x70] sm:$0xff]  ;;  %v512_v21 = vld [vmem:[#allocation7 + $0x78] sm:$0xff] }
  0x70   :  { %798 = vmatpush3.bf16.msra.mxu1 %v797_v23  ;;  %816 = vmatpush3.bf16.msra.mxu0 %v815_v14  ;;  %v379_v23 = vld [vmem:[#allocation6 + $0x60] sm:$0xff]  ;;  %v845_v14 = vpack.c.bf16 %v506_v13, %v505_v12 }
  0x71   :  { %799 = vmatprep.subr.bf16.mxu1 %v995_v0  ;;  %817 = vmatprep.subr.bf16.mxu0 %v995_v0  ;;  %v827_v25 = vpack.c.bf16 %v380_v24, %v379_v23  ;;  %v603_v23 = vld [vmem:[%s1238_s10] ss:$0 sm:$0xff] }
  0x74   :  { %801 = vmatpush3.bf16.msra.mxu1 %v800_v26  ;;  %v381_v26 = vld [vmem:[#allocation6 + $0x70] sm:$0xff] }
  0x75   :  { %802 = vmatprep.subr.bf16.mxu1 %v995_v0  ;;  %v830_v28 = vpack.c.bf16 %v382_v27, %v381_v26 }
  0x78   :  { %804 = vmatpush3.bf16.msra.mxu1 %v803_v29  ;;  %v601_v29 = vld [vmem:[%s1234_s6] ss:$0 sm:$0xff] }
  0x79   :  { %805 = vmatprep.subr.bf16.mxu1 %v995_v0 }
  0x7c   :  { %807 = vmatpush3.bf16.msra.mxu1 %v806_v32 }
  0x7d   :  { %832 = vmatprep.subr.bf16.mxu1 %v995_v0 }
 0x139   :  { %v196_v34 = vpop.f32.mrb[0].mxu0 }
 0x13a   :  { %v197_v35 = vadd.f32 %v598_v33, %v196_v34  ;;  %v672_v36 = vpop.f32.mrb[1].mxu0 }
 0x13c   :  { %v200_v37 = vmax.f32 %v197_v35, 0.0 }
 0x13e   :  { %v201_v38 = vrot.slane %v200_v37, 4  ;;  %v207_v39 = vmul.f32 %v200_v37, %v200_v37 }
 0x140   :  { %v202_v40 = vadd.f32 %v201_v38, %v200_v37  ;;  %v208_v41 = vrot.slane %v207_v39, 4 }
 0x142   :  { %v203_v42 = vrot.slane %v202_v40, 2  ;;  %v209_v43 = vadd.f32 %v208_v41, %v207_v39 }
 0x144   :  { %v204_v44 = vadd.f32 %v203_v42, %v202_v40  ;;  %v210_v45 = vrot.slane %v209_v43, 2 }
 0x146   :  { %v211_v46 = vadd.f32 %v210_v45, %v209_v43  ;;  %v205_v47 = vrot.slane %v204_v44, 1 }
 0x148   :  { %v212_v48 = vrot.slane %v211_v46, 1  ;;  %v206_v49 = vadd.f32 %v205_v47, %v204_v44 }
 0x14a   :  { %v213_v50 = vadd.f32 %v212_v48, %v211_v46  ;;  %v216_v51 = vmul.f32 0.125, %v206_v49 }
 0x14c   :  { %v217_v52 = vmul.f32 0.125, %v213_v50  ;;  %v218_v53 = vmul.f32 %v216_v51, %v216_v51  ;;  %v224_v63 = vsub.f32 %v200_v37, %v216_v51 }
 0x14e   :  { %v219_v54 = vsub.f32 %v217_v52, %v218_v53  ;;  %v344_v53 = vld [vmem:[%s1235_s7] sm:$0x1] }
 0x150   :  { %v220_v55 = vmax.f32 %v219_v54, 0.0 }
 0x152   :  { %v221_v56 = vadd.f32 1e-05, %v220_v55 }
 0x154   :  { %866 = vrsqrt.f32 %v221_v56 }
 0x15e   :  { %v867_v61 = vpop.eup %866 }
 0x15f   :  { %v223_v62 = vmul.f32 %v867_v61, %v214_v59 }
 0x161   :  { %v228_v2 = vrot.slane %v223_v62, %v1183_v60  ;;  %v497_v62 = vld [vmem:[#allocation7] sm:$0xff] }
 0x163   :  { %v229_v4 = vmul.f32 %v228_v2, %v224_v63  ;;  %v498_v63 = vld [vmem:[#allocation7 + $0x8] sm:$0xff] }
 0x164   :  { %v833_v2 = vpack.c.bf16 %v498_v63, %v497_v62 }
 0x165   :  { %v236_v5 = vadd.f32 %v600_v3, %v229_v4  ;;  %v499_v3 = vld [vmem:[#allocation7 + $0x10] sm:$0xff]  ;;  %v500_v4 = vld [vmem:[#allocation7 + $0x18] sm:$0xff] }
 0x167   :  { %706 = vmatmul.mubr.f32.vlgmr.msra.gmra.mrb[0].mxu1 %v236_v5  ;;  %v836_v5 = vpack.c.bf16 %v500_v4, %v499_v3 }
 0x168   :  { %775 = vmatprep.mubr.msk.f32.mxu1 %vm996_vm0, %v997_v1  ;;  %v374_v1 = vld [vmem:[#allocation6 + $0x38] sm:$0xff]  ;;  %834 = vmatpush3.bf16.msra.mxu1 %v833_v2 }
 0x169   :  { %v818_v16 = vpack.c.bf16 %v374_v1, %v373_v15  ;;  %835 = vmatprep.subr.bf16.mxu1 %v995_v0  ;;  %v507_v15 = vld [vmem:[#allocation7 + $0x50] sm:$0xff]  ;;  %v508_v1 = vld [vmem:[#allocation7 + $0x58] sm:$0xff] }
 0x16b   :  { %819 = vmatpush3.bf16.msra.mxu0 %v818_v16  ;;  %v848_v16 = vpack.c.bf16 %v508_v1, %v507_v15 }
 0x16c   :  { %820 = vmatprep.subr.bf16.mxu0 %v995_v0  ;;  %837 = vmatpush3.bf16.msra.mxu1 %v836_v5 }
 0x16d   :  { %838 = vmatprep.subr.bf16.mxu1 %v995_v0 }
 0x16f   :  { %822 = vmatpush3.bf16.msra.mxu0 %v821_v19  ;;  %v851_v19 = vpack.c.bf16 %v510_v18, %v509_v17 }
 0x170   :  { %823 = vmatprep.subr.bf16.mxu0 %v995_v0  ;;  %840 = vmatpush3.bf16.msra.mxu1 %v839_v8 }
 0x171   :  { %841 = vmatprep.subr.bf16.mxu1 %v995_v0 }
 0x173   :  { %825 = vmatpush3.bf16.msra.mxu0 %v824_v22  ;;  %v854_v22 = vpack.c.bf16 %v512_v21, %v511_v20 }
 0x174   :  { %826 = vmatprep.subr.bf16.mxu0 %v995_v0  ;;  %843 = vmatpush3.bf16.msra.mxu1 %v842_v11 }
 0x175   :  { %844 = vmatprep.subr.bf16.mxu1 %v995_v0 }
 0x177   :  { %828 = vmatpush3.bf16.msra.mxu0 %v827_v25 }
 0x178   :  { %829 = vmatprep.subr.bf16.mxu0 %v995_v0  ;;  %846 = vmatpush3.bf16.msra.mxu1 %v845_v14 }
 0x179   :  { %847 = vmatprep.subr.bf16.mxu1 %v995_v0 }
 0x17b   :  { %831 = vmatpush3.bf16.msra.mxu0 %v830_v28 }
 0x17c   :  { %849 = vmatpush3.bf16.msra.mxu1 %v848_v16 }
 0x17d   :  { %850 = vmatprep.subr.bf16.mxu1 %v995_v0 }
 0x180   :  { %852 = vmatpush3.bf16.msra.mxu1 %v851_v19 }
 0x181   :  { %853 = vmatprep.subr.bf16.mxu1 %v995_v0 }
 0x184   :  { %855 = vmatpush3.bf16.msra.mxu1 %v854_v22 }
 0x23a   :  { %v326_v30 = vpop.f32.mrb[0].mxu1 }
 0x23b   :  { %v327_v31 = vadd.f32 %v601_v29, %v326_v30  ;;  %v707_v32 = vpop.f32.mrb[1].mxu1 }
 0x23d   :  { %v330_v33 = vmax.f32 %v327_v31, 0.0 }
 0x23f   :  { %v331_v34 = vrot.slane %v330_v33, 4  ;;  %v337_v35 = vmul.f32 %v330_v33, %v330_v33 }
 0x241   :  { %v332_v36 = vadd.f32 %v331_v34, %v330_v33  ;;  %v338_v37 = vrot.slane %v337_v35, 4 }
 0x243   :  { %v333_v38 = vrot.slane %v332_v36, 2  ;;  %v339_v39 = vadd.f32 %v338_v37, %v337_v35 }
 0x245   :  { %v334_v40 = vadd.f32 %v333_v38, %v332_v36  ;;  %v340_v41 = vrot.slane %v339_v39, 2 }
 0x247   :  { %v335_v42 = vrot.slane %v334_v40, 1  ;;  %v341_v43 = vadd.f32 %v340_v41, %v339_v39 }
 0x249   :  { %v336_v44 = vadd.f32 %v335_v42, %v334_v40  ;;  %v342_v45 = vrot.slane %v341_v43, 1 }
 0x24b   :  { %v343_v46 = vadd.f32 %v342_v45, %v341_v43  ;;  %v346_v47 = vmul.f32 0.125, %v336_v44 }
 0x24d   :  { %v347_v48 = vmul.f32 0.125, %v343_v46  ;;  %v348_v49 = vmul.f32 %v346_v47, %v346_v47  ;;  %v354_v56 = vsub.f32 %v330_v33, %v346_v47  ;;  %v474_v46 = vld [vmem:[%s1239_s11] sm:$0x1] }
 0x24f   :  { %v349_v50 = vsub.f32 %v347_v48, %v348_v49 }
 0x251   :  { %v350_v51 = vmax.f32 %v349_v50, 0.0 }
 0x253   :  { %v351_v52 = vadd.f32 1e-05, %v350_v51  ;;  %v604_v51 = vld [vmem:[%s1240_s12] ss:$0 sm:$0xff] }
 0x255   :  { %868 = vrsqrt.f32 %v351_v52 }
 0x25f   :  { %v869_v54 = vpop.eup %868 }
 0x260   :  { %v353_v55 = vmul.f32 %v869_v54, %v344_v53  ;;  %v605_v54 = vld [vmem:[#allocation9] ss:$0 sm:$0xff] }
 0x262   :  { %v358_v57 = vrot.slane %v353_v55, %v1183_v60 }
 0x264   :  { %v359_v59 = vmul.f32 %v358_v57, %v354_v56 }
 0x266   :  { %v366_v61 = vadd.f32 %v602_v58, %v359_v59 }
 0x268   :  { %741 = vmatmul.mubr.f32.vlgmr.msra.gmra.mrb[2].mxu0 %v366_v61 }
 0x33b   :  { %v456_v24 = vpop.f32.mrb[2].mxu0 }
 0x33c   :  { %v457_v25 = vadd.f32 %v603_v23, %v456_v24  ;;  %v742_v26 = vpop.f32.mrb[3].mxu0 }
 0x33e   :  { %v460_v27 = vmax.f32 %v457_v25, 0.0 }
 0x340   :  { %v461_v28 = vrot.slane %v460_v27, 4  ;;  %v467_v29 = vmul.f32 %v460_v27, %v460_v27 }
 0x342   :  { %v462_v30 = vadd.f32 %v461_v28, %v460_v27  ;;  %v468_v31 = vrot.slane %v467_v29, 4 }
 0x344   :  { %v463_v32 = vrot.slane %v462_v30, 2  ;;  %v469_v33 = vadd.f32 %v468_v31, %v467_v29 }
 0x346   :  { %v464_v34 = vadd.f32 %v463_v32, %v462_v30  ;;  %v470_v35 = vrot.slane %v469_v33, 2 }
 0x348   :  { %v465_v36 = vrot.slane %v464_v34, 1  ;;  %v471_v37 = vadd.f32 %v470_v35, %v469_v33 }
 0x34a   :  { %v466_v0 = vadd.f32 %v465_v36, %v464_v34  ;;  %v472_v38 = vrot.slane %v471_v37, 1 }
 0x34c   :  { %v473_v39 = vadd.f32 %v472_v38, %v471_v37  ;;  %v476_v40 = vmul.f32 0.125, %v466_v0 }
 0x34e   :  { %v477_v41 = vmul.f32 0.125, %v473_v39  ;;  %v478_v42 = vmul.f32 %v476_v40, %v476_v40  ;;  %v484_v49 = vsub.f32 %v460_v27, %v476_v40 }
 0x350   :  { %v479_v43 = vsub.f32 %v477_v41, %v478_v42 }
 0x352   :  { %v480_v44 = vmax.f32 %v479_v43, 0.0 }
 0x354   :  { %v481_v45 = vadd.f32 1e-05, %v480_v44 }
 0x356   :  { %870 = vrsqrt.f32 %v481_v45 }
 0x360   :  { %v871_v47 = vpop.eup %870 }
 0x361   :  { %v483_v48 = vmul.f32 %v871_v47, %v474_v46 }
 0x363   :  { %v488_v50 = vrot.slane %v483_v48, %v1183_v60 }
 0x365   :  { %v489_v52 = vmul.f32 %v488_v50, %v484_v49 }
 0x367   :  { %v496_v53 = vadd.f32 %v604_v51, %v489_v52 }
 0x369   :  { %776 = vmatmul.mubr.f32.vlgmr.msra.gmra.mrb[2].mxu1 %v496_v53 }
 0x43c   :  { %v586_v55 = vpop.f32.mrb[2].mxu1 }
 0x43d   :  { %v587_v56 = vadd.f32 %v605_v54, %v586_v55  ;;  %v777_v57 = vpop.f32.mrb[3].mxu1 }
 0x43f   :  { %590 = vst [vmem:[%s1245_s28] sm:$0xff] %v587_v56 }
 0x440   :  { %595 = vsyncpa [#allocation3], 1 }
 0x441   :  { %596 = vsyncpa [#allocation5], 1 }
 0x442   :  { %597 = vsyncpa [#allocation8], 1 }

</bundles_post_ra>
